<compile_context>
chip_gen: v7x
topology: tpu7x:2x2x1
jax: 0.10.0
libtpu: 0.0.40
codegen_flags: <defaults>
</compile_context>

<pallas_src>
import jax
import jax.numpy as jnp
from jax import lax
from jax.experimental import pallas as pl
from jax.experimental.pallas import tpu as pltpu


def _linear_kernel(x_ref, w_ref, b_ref, o_ref):
    # x_ref: (TBF, K)   VMEM   folded batch tile (K = fold * feat_dim, lane-dense)
    # w_ref: (CF, K)    VMEM   block-diagonal folded weight, resident across grid
    # b_ref: (CF, 1)    VMEM   folded bias, resident across grid
    # o_ref: (CF, TBF)  VMEM   lane-dense logits tile (batch on the lane axis)
    acc = lax.dot_general(
        w_ref[...],
        x_ref[...],
        dimension_numbers=(((1,), (1,)), ((), ())),  # contract K with K
        preferred_element_type=jnp.float32,
    )
    o_ref[...] = (acc + b_ref[...]).astype(o_ref.dtype)


def maml_layer_forward(x, weight, bias, *, block_rows=16384, fold=None,
                       bf16_inputs=False):
    """Pallas implementation of MAMLLayer.forward.

    x:           (batch, feat_dim) float32
    weight:      (way_num, feat_dim) float32   (PyTorch nn.Linear convention)
    bias:        (way_num,) float32
    block_rows:  batch tile size in *original* rows (folded internally)
    fold:        samples packed per folded row (None -> auto: 128 // feat_dim)
    bf16_inputs: cast x / weight to bf16 (f32 accumulate); relaxed tolerance
    returns (batch, way_num) float32
    """
    B, D = x.shape
    C, D2 = weight.shape
    assert D == D2, f"feature-dim mismatch: x has {D}, weight has {D2}"
    assert bias.shape == (C,)

    # ---- Sample folding: fill the lane / K axis -----------------------------
    if fold is None:
        fold = 128 // D if (D < 128 and 128 % D == 0) else 1
    assert fold >= 1
    K = fold * D
    CF = fold * C

    # Pad batch to a multiple of `fold`; padded rows only affect output columns
    # that are dropped below (block-diagonal weight => no cross-sample mixing).
    Bp = ((B + fold - 1) // fold) * fold
    if Bp != B:
        x = jnp.pad(x, ((0, Bp - B), (0, 0)))
    BF = Bp // fold
    x_fold = x.reshape(BF, K)                       # free contiguous reshape

    # Block-diagonal folded weight: w_fold[f*C + c, f*D + d] = W[c, d].
    w_fold = jnp.kron(jnp.eye(fold, dtype=weight.dtype), weight)   # (CF, K)
    b_fold = jnp.tile(bias, fold).reshape(CF, 1)                   # (CF, 1)

    if bf16_inputs:
        x_fold = x_fold.astype(jnp.bfloat16)
        w_fold = w_fold.astype(jnp.bfloat16)

    # ---- Batch tiling (folded rows) -----------------------------------------
    # The lane-dense out block (CF, TBF) needs TBF % 128 == 0 when tiling; a
    # single full-extent block is always layout-legal for small batches.
    tbf_req = max(1, block_rows // fold)
    if BF <= tbf_req:
        tbf = BF
    else:
        tbf = max(128, (tbf_req // 128) * 128)
    grid = (pl.cdiv(BF, tbf),)

    out = pl.pallas_call(
        _linear_kernel,
        out_shape=jax.ShapeDtypeStruct((CF, BF), jnp.float32),
        grid=grid,
        in_specs=[
            pl.BlockSpec((tbf, K), lambda i: (i, 0)),   # stream folded x tiles
            pl.BlockSpec((CF, K), lambda i: (0, 0)),    # weight stays resident
            pl.BlockSpec((CF, 1), lambda i: (0, 0)),    # bias stays resident
        ],
        out_specs=pl.BlockSpec((CF, tbf), lambda i: (0, i)),  # lane-dense out
        compiler_params=pltpu.CompilerParams(
            # Batch tiles are independent -> shard across TCs on v7x megacore.
            dimension_semantics=("parallel",),
        ),
    )(x_fold, w_fold, b_fold)

    # ---- Un-fold: (CF, BF) -> (B, C) ----------------------------------------
    # out[f*C + c, j] corresponds to sample (fold*j + f), class c.
    y = out.reshape(fold, C, BF).transpose(2, 0, 1).reshape(Bp, C)
    return y[:B]


if __name__ == "__main__":
    feat_dim, way_num = 64, 5

    key = jax.random.PRNGKey(0)
    kx, kw, kb, kx2 = jax.random.split(key, 4)

    # Deterministic parameter init (mimics nn.Linear uniform(-1/sqrt(D), 1/sqrt(D)))
    bound = 1.0 / (feat_dim ** 0.5)
    weight = jax.random.uniform(kw, (way_num, feat_dim), jnp.float32, -bound, bound)
    bias = jax.random.uniform(kb, (way_num,), jnp.float32, -bound, bound)

    # Case 1: typical small MAML inner-loop batch (single-block path).
    batch = 8
    x = jax.random.normal(kx, (batch, feat_dim), jnp.float32)
    out = jax.block_until_ready(maml_layer_forward(x, weight, bias))
    ref = x @ weight.T + bias
    assert out.shape == (batch, way_num)
    assert jnp.allclose(out, ref, atol=1e-5, rtol=1e-5)

    # Case 2: tiled / ragged path: odd batch (needs fold padding), grid=2 with a
    # ragged last output block.
    batch2 = 301
    x2 = jax.random.normal(kx2, (batch2, feat_dim), jnp.float32)
    out2 = jax.block_until_ready(
        maml_layer_forward(x2, weight, bias, block_rows=256))
    ref2 = x2 @ weight.T + bias
    assert out2.shape == (batch2, way_num)
    assert jnp.allclose(out2, ref2, atol=1e-5, rtol=1e-5)

    # Case 3: fold-by-4 (K=256, matches v6e/v7x 256-deep MXU) — same numerics.
    out3 = jax.block_until_ready(
        maml_layer_forward(x, weight, bias, fold=4))
    assert out3.shape == (batch, way_num)
    assert jnp.allclose(out3, ref, atol=1e-5, rtol=1e-5)

    # Case 4: optional bf16 input cast (halves HBM traffic on x for v5e);
    # relaxed tolerance since bf16 rounding of the 64-term reduction inputs
    # cannot meet 1e-5.
    out4 = jax.block_until_ready(
        maml_layer_forward(x2, weight, bias, block_rows=256, bf16_inputs=True))
    assert out4.shape == (batch2, way_num)
    assert jnp.allclose(out4, ref2, atol=5e-2, rtol=5e-2)

    print("KERNEL_OK")
</pallas_src>

<mosaic_0001>
module attributes {stable_mosaic.version = 11 : i64} {
  func.func @_linear_kernel(%arg0: i32, %arg1: memref<4x128xf32, #tpu.memory_space<vmem>>, %arg2: memref<10x128xf32, #tpu.memory_space<vmem>>, %arg3: memref<10x1xf32, #tpu.memory_space<vmem>>, %arg4: memref<10x4xf32, #tpu.memory_space<vmem>>) attributes {dimension_semantics = [#tpu.dimension_semantics<parallel>], iteration_bounds = array<i64: 1>, scalar_prefetch = 0 : i64, scratch_operands = 0 : i64, tpu.core_type = #tpu.core_type<tc>, window_params = [{transform_indices = @transform_0, window_bounds = array<i64: 4, 128>}, {pipeline_mode = #tpu.pipeline_mode<synchronous>, transform_indices = @transform_1, window_bounds = array<i64: 10, 128>}, {pipeline_mode = #tpu.pipeline_mode<synchronous>, transform_indices = @transform_2, window_bounds = array<i64: 10, 1>}, {transform_indices = @transform_3, window_bounds = array<i64: 10, 4>}]} {
    %c0 = arith.constant 0 : index
    %c0_0 = arith.constant 0 : index
    %0 = vector.load %arg2[%c0, %c0_0] : memref<10x128xf32, #tpu.memory_space<vmem>>, vector<10x128xf32>
    %c0_1 = arith.constant 0 : index
    %c0_2 = arith.constant 0 : index
    %1 = vector.load %arg1[%c0_1, %c0_2] : memref<4x128xf32, #tpu.memory_space<vmem>>, vector<4x128xf32>
    %cst = arith.constant dense<0.000000e+00> : vector<10x4xf32>
    %2 = tpu.matmul %0, %1, %cst {dimension_numbers = #tpu.dot_dimension_numbers<[1], [1], [0], [0], [0, 0, 1, 0], [], []>} : vector<10x128xf32>, vector<4x128xf32>, vector<10x4xf32> -> vector<10x4xf32>
    %c0_3 = arith.constant 0 : index
    %c0_4 = arith.constant 0 : index
    %3 = vector.load %arg3[%c0_3, %c0_4] : memref<10x1xf32, #tpu.memory_space<vmem>>, vector<10x1xf32>
    %4 = vector.broadcast %3 : vector<10x1xf32> to vector<10x4xf32>
    %5 = arith.addf %2, %4 : vector<10x4xf32>
    %c0_5 = arith.constant 0 : index
    %c0_6 = arith.constant 0 : index
    %6 = vector.load %arg4[%c0_5, %c0_6] : memref<10x4xf32, #tpu.memory_space<vmem>>, vector<10x4xf32>
    tpu.vector_store %arg4[%c0_5, %c0_6], %5 {strides = array<i32>} : memref<10x4xf32, #tpu.memory_space<vmem>>, vector<10x4xf32>,
    return
  }
  func.func @transform_0(%arg0: i32) -> (i32, i32) {
    %c0_i32 = arith.constant 0 : i32
    %c0_i32_0 = arith.constant 0 : i32
    return %arg0, %c0_i32 : i32, i32
  }
  func.func @transform_1(%arg0: i32) -> (i32, i32) {
    %c0_i32 = arith.constant 0 : i32
    %c0_i32_0 = arith.constant 0 : i32
    %c0_i32_1 = arith.constant 0 : i32
    return %c0_i32, %c0_i32_0 : i32, i32
  }
  func.func @transform_2(%arg0: i32) -> (i32, i32) {
    %c0_i32 = arith.constant 0 : i32
    %c0_i32_0 = arith.constant 0 : i32
    %c0_i32_1 = arith.constant 0 : i32
    return %c0_i32, %c0_i32_0 : i32, i32
  }
  func.func @transform_3(%arg0: i32) -> (i32, i32) {
    %c0_i32 = arith.constant 0 : i32
    %c0_i32_0 = arith.constant 0 : i32
    return %c0_i32, %arg0 : i32, i32
  }
}

</mosaic_0001>

<bundles_post_ra>
// kernel: tpu_custom_call.1
= control target key start
LH: loop header
LB: loop body
LE: loop exit
PB: predicated region body
PF: predicated region fallthrough
CT: control target
= control target key end

     0   :  { %v122_v2 = vmov 0   ;;  %vm106_vm0 = vcmask 25600   ;;  %vm104_vm1 = vcmask 31744   ;;  %s164_s0 = inlined_call_operand.vmem [shape: f32[4,128], index: 0, kind: input, shape index: {}]   ;;  %s165_s1 = inlined_call_operand.vmem [shape: f32[10,128], index: 1, kind: input, shape index: {}]   ;;  %s166_s2 = inlined_call_operand.vmem [shape: f32[10,1], index: 2, kind: input, shape index: {}]   ;;  %s167_s3 = inlined_call_operand.vmem [shape: f32[10,4], index: 3, kind: output, shape index: {}]  }
   0x1   :  { %v16_v0 = vld [vmem:[%s164_s0] sm:$0xf]  ;;  %121 = vset.pattern.permute.xlu0 %v122_v2  ;;  %v15_v4 = vld [vmem:[%s165_s1 + $0x8] sm:$0x3] }
   0x2   :  { %v14_v1 = vld [vmem:[%s165_s1] sm:$0xff]  ;;  %115 = vmatprep.subr.mxu0 %v16_v0  ;;  %v18_v5 = vld [vmem:[%s166_s2 + $0x8] sm:$0x3] }
   0x3   :  { %117 = vmatprep.mubr.f32.mxu0 %v14_v1  ;;  %v17_v3 = vld [vmem:[%s166_s2] sm:$0xff]  ;;  %116 = vmatpush3.xpose.msra.mxu0 %v16_v0 }
   0x4   :  { %21 = vperm.xlu0 %121, %v17_v3  }
   0x6   :  { %118 = vmatmul.mubr.f32.vlgmr.msra.gmra.mrb[0].mxu0 %v15_v4 }
   0x8   :  { %26 = vperm.xlu0 %121, %v18_v5  }
  0x83   :  { %v22_v6 = vpop.permute.xlu0 %21 }
  0x87   :  { %v27_v7 = vpop.permute.xlu0 %26 }
  0xd9   :  { %v119_v8 = vpop.f32.mrb[0].mxu0 }
  0xda   :  { %v101_v9 = vadd.f32 %v119_v8, %v27_v7  ;;  %v95_v10 = vpop.f32.mrb[1].mxu0 }
  0xdb   :  { %v96_v11 = vadd.f32 %v95_v10, %v22_v6 }
  0xdc   :  { %107 = vst.msk [vmem:[%s167_s3 + $0x8] sm:$0x3] %vm106_vm0, %v101_v9 }
  0xdd   :  { %105 = vst.msk [vmem:[%s167_s3] sm:$0xff] %vm104_vm1, %v96_v11 }

</bundles_post_ra>
